<compile_context>
chip_gen: v7x
topology: tpu7x:2x2x1
jax: 0.10.0
libtpu: 0.0.40
codegen_flags: <defaults>
</compile_context>

<pallas_src>
from functools import partial

import jax
import jax.numpy as jnp
from jax.experimental import pallas as pl
from jax.experimental.pallas import tpu as pltpu


_TILE_SRC = 512   # src (reduction) tile cap -> lanes of the adjacency tile
_TILE_DST = 256   # dst tile cap             -> sublanes of the adjacency tile
_TILE_K = 512     # fc contraction tile cap


def _round_up(x, m):
    return ((x + m - 1) // m) * m


# ---------------------------------------------------------------------------
# fc projection kernel: feat = x @ w  (bf16 MXU inputs, f32 accumulate)
# ---------------------------------------------------------------------------
def _fc_kernel(x_ref, w_ref, o_ref, acc_ref):
    @pl.when(pl.program_id(1) == 0)
    def _():
        acc_ref[...] = jnp.zeros_like(acc_ref)

    acc_ref[...] += jnp.dot(
        x_ref[...], w_ref[...], preferred_element_type=jnp.float32)

    @pl.when(pl.program_id(1) == pl.num_programs(1) - 1)
    def _():
        o_ref[...] = acc_ref[...].astype(o_ref.dtype)


def fc_project(x, w, *, tile_m):
    """x: (pad_n, K) bf16, w: (K, H*D) bf16 -> feat: (pad_n, H*D) bf16."""
    pad_n, k_dim = x.shape
    hd = w.shape[1]

    if k_dim <= _TILE_K:
        tile_k, pad_k = k_dim, k_dim
    else:
        tile_k = _TILE_K
        pad_k = _round_up(k_dim, tile_k)
    if pad_k != k_dim:
        x = jnp.pad(x, ((0, 0), (0, pad_k - k_dim)))
        w = jnp.pad(w, ((0, pad_k - k_dim), (0, 0)))

    return pl.pallas_call(
        _fc_kernel,
        out_shape=jax.ShapeDtypeStruct((pad_n, hd), jnp.bfloat16),
        grid=(pad_n // tile_m, pad_k // tile_k),
        in_specs=[
            pl.BlockSpec((tile_m, tile_k), lambda i, k: (i, k)),
            pl.BlockSpec((tile_k, hd), lambda i, k: (k, 0)),
        ],
        out_specs=pl.BlockSpec((tile_m, hd), lambda i, k: (i, 0)),
        scratch_shapes=[pltpu.VMEM((tile_m, hd), jnp.float32)],
        compiler_params=pltpu.CompilerParams(
            dimension_semantics=("parallel", "arbitrary")),
    )(x, w)


# ---------------------------------------------------------------------------
# Flash-style masked edge-softmax aggregation kernel
#   grid = (dst_tiles [parallel], src_tiles [arbitrary, last])
#   Scalar-prefetched per-tile edge counts gate the per-tile compute.
# ---------------------------------------------------------------------------
def _gat_attn_kernel(n_heads, out_dim, apply_relu,
                     cnt_ref, fs_ref, adj_ref, el_ref, er_ref, b_ref,
                     o_ref, m_scr, l_scr, acc_scr):
    di = pl.program_id(0)
    si = pl.program_id(1)
    n_src_tiles = pl.num_programs(1)
    d = out_dim

    @pl.when(si == 0)
    def _():
        m_scr[...] = jnp.full(m_scr.shape, -1e30, jnp.float32)
        l_scr[...] = jnp.zeros_like(l_scr)
        acc_scr[...] = jnp.zeros_like(acc_scr)

    # Skip completely empty (dst_tile, src_tile) adjacency tiles.
    @pl.when(cnt_ref[di * n_src_tiles + si] > 0)
    def _():
        fs_bf = fs_ref[...]                              # (ts, H*D) bf16 src features
        mask_f = adj_ref[...].astype(jnp.float32)        # (td, ts) 0/1; hoisted out of head loop
        el = el_ref[...]                                 # (H, ts) f32, per-src logits
        er = er_ref[...]                                 # (td, H) f32, per-dst logits

        for h in range(n_heads):                         # static unroll; heads live in lanes
            lo, hi = h * d, (h + 1) * d
            # e[i, j] = er[i] + el[j] (hoisted per-node logits; sublane/lane broadcasts)
            e = er[:, h:h + 1] + el[h:h + 1, :]          # (td, ts)
            e = jnp.maximum(e, 0.2 * e)                  # LeakyReLU(0.2)

            # online softmax; masked edges contribute via the multiplicative
            # mask on p (m_new over unmasked e is still a valid shift).
            m_prev = m_scr[h]
            m_new = jnp.maximum(m_prev, jnp.max(e, axis=-1, keepdims=True))
            p = jnp.exp(e - m_new) * mask_f
            scale = jnp.exp(m_prev - m_new)
            l_scr[h] = scale * l_scr[h] + jnp.sum(p, axis=-1, keepdims=True)
            acc_scr[h] = scale * acc_scr[h] + jnp.dot(
                p.astype(jnp.bfloat16), fs_bf[:, lo:hi],   # bf16 MXU, f32 accumulate
                preferred_element_type=jnp.float32)
            m_scr[h] = m_new

    @pl.when(si == n_src_tiles - 1)
    def _():
        b_all = b_ref[...]
        outs = []
        for h in range(n_heads):
            l = l_scr[h]
            inv = pl.reciprocal(jnp.where(l > 0.0, l, 1.0), approx=True)
            # zero-in-degree rows (allow_zero_in_degree=True): l == 0 -> bias only
            rst = acc_scr[h] * inv + b_all[h:h + 1, :]
            if apply_relu:
                rst = jnp.maximum(rst, 0.0)
            outs.append(rst)
        full = outs[0] if n_heads == 1 else jnp.concatenate(outs, axis=-1)
        o_ref[...] = full.astype(o_ref.dtype)            # one lane-dense slab store


# ---------------------------------------------------------------------------
# Per-block one-time preparation (padding, int8 conversion, tile edge counts)
# ---------------------------------------------------------------------------
def prepare_block(adj):
    """adj: (N_dst, N_src), nonzero => edge src->dst. Done ONCE per graph block."""
    n_dst, n_src = adj.shape
    tile_src = min(_TILE_SRC, _round_up(n_src, 128))    # lane dim of adj tile
    tile_dst = min(_TILE_DST, _round_up(n_dst, 32))     # sublane dim (int8-safe)
    pad_src = _round_up(n_src, tile_src)
    pad_dst = _round_up(n_dst, tile_dst)

    adj_i8 = (adj != 0).astype(jnp.int8)
    adj_p = jnp.zeros((pad_dst, pad_src), jnp.int8).at[:n_dst, :n_src].set(adj_i8)

    n_dt, n_st = pad_dst // tile_dst, pad_src // tile_src
    counts = jnp.sum(
        adj_p.reshape(n_dt, tile_dst, n_st, tile_src),
        axis=(1, 3), dtype=jnp.int32).reshape(-1)        # flat 1D -> cheap SMEM layout

    return dict(adj_p=adj_p, counts=counts,
                n_dst=n_dst, n_src=n_src,
                tile_dst=tile_dst, tile_src=tile_src,
                pad_dst=pad_dst, pad_src=pad_src)


# ---------------------------------------------------------------------------
# One GATConv layer
# ---------------------------------------------------------------------------
def gat_layer(h_src, block, w, attn_l, attn_r, bias, n_heads, out_dim,
              apply_relu, out_dtype):
    """h_src: (N_src, in_dim); block: output of prepare_block."""
    n_src, in_dim = h_src.shape
    assert n_src == block["n_src"]
    n_dst = block["n_dst"]
    assert n_dst <= n_src                                 # DGL block convention
    tile_src, tile_dst = block["tile_src"], block["tile_dst"]
    pad_src, pad_dst = block["pad_src"], block["pad_dst"]
    hd = n_heads * out_dim

    # ---- fc projection (bf16 end-to-end, padded src rows are zero) ---------
    x_p = jnp.zeros((pad_src, in_dim), jnp.bfloat16).at[:n_src].set(
        h_src.astype(jnp.bfloat16))
    feat = fc_project(x_p, w.astype(jnp.bfloat16), tile_m=tile_src)  # (pad_src, hd) bf16

    al = attn_l.reshape(n_heads, out_dim).astype(jnp.float32)
    ar = attn_r.reshape(n_heads, out_dim).astype(jnp.float32)
    b = bias.reshape(n_heads, out_dim).astype(jnp.float32)

    # ---- hoisted per-node logits (tiny XLA einsums, once per layer) --------
    feat3 = feat.reshape(pad_src, n_heads, out_dim).astype(jnp.float32)
    el = jnp.einsum("shd,hd->hs", feat3, al)                          # (H, pad_src) f32
    er = jnp.zeros((pad_dst, n_heads), jnp.float32).at[:n_dst].set(
        jnp.einsum("shd,hd->sh", feat3[:n_dst], ar))                  # (pad_dst, H) f32

    grid = (pad_dst // tile_dst, pad_src // tile_src)
    kernel = partial(_gat_attn_kernel, n_heads, out_dim, apply_relu)
    out = pl.pallas_call(
        kernel,
        out_shape=jax.ShapeDtypeStruct((pad_dst, hd), out_dtype),
        grid_spec=pltpu.PrefetchScalarGridSpec(
            num_scalar_prefetch=1,                       # per-tile edge counts (SMEM)
            grid=grid,
            in_specs=[
                # src-node feature tile (per-head lane slices taken in-kernel)
                pl.BlockSpec((tile_src, hd), lambda di, si, cnt: (si, 0)),
                # int8 adjacency tile
                pl.BlockSpec((tile_dst, tile_src), lambda di, si, cnt: (di, si)),
                # hoisted per-src logits  (H, tile_src)
                pl.BlockSpec((n_heads, tile_src), lambda di, si, cnt: (0, si)),
                # hoisted per-dst logits  (tile_dst, H)
                pl.BlockSpec((tile_dst, n_heads), lambda di, si, cnt: (di, 0)),
                # bias
                pl.BlockSpec((n_heads, out_dim), lambda di, si, cnt: (0, 0)),
            ],
            out_specs=pl.BlockSpec((tile_dst, hd), lambda di, si, cnt: (di, 0)),
            scratch_shapes=[
                pltpu.VMEM((n_heads, tile_dst, 1), jnp.float32),        # running max
                pltpu.VMEM((n_heads, tile_dst, 1), jnp.float32),        # running sum
                pltpu.VMEM((n_heads, tile_dst, out_dim), jnp.float32),  # running acc
            ],
        ),
        compiler_params=pltpu.CompilerParams(
            dimension_semantics=("parallel", "arbitrary")),
    )(block["counts"], feat, block["adj_p"], el, er, b)

    return out[:n_dst]   # (n_dst, H*D) lane-dense; inter-layer flatten is a no-op


# ---------------------------------------------------------------------------
# DistGAT forward (glue)
# ---------------------------------------------------------------------------
def dist_gat_forward(params, blocks, x):
    h = x
    n_layers = len(params)
    for i, (p, blk) in enumerate(zip(params, blocks)):
        last = (i == n_layers - 1)
        out = gat_layer(
            h, blk, p["w"], p["attn_l"], p["attn_r"], p["bias"],
            p["n_heads"], p["out_dim"],
            apply_relu=not last,
            out_dtype=jnp.float32 if last else jnp.bfloat16,
        )
        if last:
            H = p["n_heads"]
            if H > 1:  # module asserts n_heads[-1] == 1, so this is a no-op path
                out = out.reshape(out.shape[0], H, p["out_dim"]).mean(axis=1)
            h = out
        else:
            h = out                      # already lane-dense (N_dst, H*D)
    return h


def make_params(key, in_feats, n_hidden, n_classes, n_layers, n_heads):
    assert len(n_heads) == n_layers and n_heads[-1] == 1
    params = []
    for i in range(n_layers):
        in_dim = in_feats if i == 0 else n_hidden * n_heads[i - 1]
        out_dim = n_classes if i == n_layers - 1 else n_hidden
        h = n_heads[i]
        key, k1, k2, k3 = jax.random.split(key, 4)
        params.append({
            # weights stored bf16 (inference); softmax/attn math stays f32
            "w": (jax.random.normal(k1, (in_dim, h * out_dim), jnp.float32) * 0.1
                  ).astype(jnp.bfloat16),
            "attn_l": jax.random.normal(k2, (h, out_dim), jnp.float32) * 0.1,
            "attn_r": jax.random.normal(k3, (h, out_dim), jnp.float32) * 0.1,
            "bias": jnp.zeros((h * out_dim,), jnp.float32),
            "n_heads": h,
            "out_dim": out_dim,
        })
    return params


if __name__ == "__main__":
    # small config consistent with the module: 2 layers, heads [2, 1]
    in_feats, n_hidden, n_classes = 32, 16, 8
    n_layers, n_heads = 2, [2, 1]

    # block sizes: layer0: 64 src -> 32 dst ; layer1: 32 src -> 16 dst
    n_src0, n_dst0, n_dst1 = 64, 32, 16

    key = jax.random.PRNGKey(0)
    key, kx, ka0, ka1, kp = jax.random.split(key, 5)

    x = jax.random.normal(kx, (n_src0, in_feats), jnp.float32)
    # adjacency stored as int8 (nonzero => edge src->dst)
    adj0 = (jax.random.uniform(ka0, (n_dst0, n_src0)) < 0.3).astype(jnp.int8)
    adj1 = (jax.random.uniform(ka1, (n_dst1, n_dst0)) < 0.3).astype(jnp.int8)

    # per-block preparation (padding, int8, tile edge counts) done ONCE
    blocks = [prepare_block(adj0), prepare_block(adj1)]

    params = make_params(kp, in_feats, n_hidden, n_classes, n_layers, n_heads)

    out = dist_gat_forward(params, blocks, x)
    out = jax.block_until_ready(out)
    assert out.shape == (n_dst1, n_classes), out.shape
    assert bool(jnp.all(jnp.isfinite(out)))
    print("KERNEL_OK")
</pallas_src>

<mosaic_0001>
module attributes {stable_mosaic.version = 11 : i64} {
  func.func @_fc_kernel(%arg0: i32, %arg1: i32, %arg2: memref<128x32xbf16, #tpu.memory_space<vmem>>, %arg3: memref<32x32xbf16, #tpu.memory_space<vmem>>, %arg4: memref<128x32xbf16, #tpu.memory_space<vmem>>, %arg5: memref<128x32xf32, #tpu.memory_space<vmem>>) attributes {dimension_semantics = [#tpu.dimension_semantics<parallel>, #tpu.dimension_semantics<arbitrary>], iteration_bounds = array<i64: 1, 1>, scalar_prefetch = 0 : i64, scratch_operands = 1 : i64, tpu.core_type = #tpu.core_type<tc>, window_params = [{transform_indices = @transform_0, window_bounds = array<i64: 128, 32>}, {transform_indices = @transform_1, window_bounds = array<i64: 32, 32>}, {transform_indices = @transform_2, window_bounds = array<i64: 128, 32>}]} {
    %c0_i32 = arith.constant 0 : i32
    %0 = arith.cmpi eq, %arg1, %c0_i32 : i32
    %1 = arith.extui %0 : i1 to i32
    %c0_i32_0 = arith.constant 0 : i32
    %2 = arith.cmpi ne, %1, %c0_i32_0 : i32
    scf.if %2 {
      %cst_10 = arith.constant 0.000000e+00 : f32
      %12 = vector.broadcast %cst_10 : f32 to vector<128x32xf32>
      %c0_11 = arith.constant 0 : index
      %c0_12 = arith.constant 0 : index
      %13 = vector.load %arg5[%c0_11, %c0_12] : memref<128x32xf32, #tpu.memory_space<vmem>>, vector<128x32xf32>
      tpu.vector_store %arg5[%c0_11, %c0_12], %12 {strides = array<i32>} : memref<128x32xf32, #tpu.memory_space<vmem>>, vector<128x32xf32>,
    } else {
    }
    %c0 = arith.constant 0 : index
    %c0_1 = arith.constant 0 : index
    %3 = vector.load %arg5[%c0, %c0_1] : memref<128x32xf32, #tpu.memory_space<vmem>>, vector<128x32xf32>
    %c0_2 = arith.constant 0 : index
    %c0_3 = arith.constant 0 : index
    %4 = vector.load %arg2[%c0_2, %c0_3] : memref<128x32xbf16, #tpu.memory_space<vmem>>, vector<128x32xbf16>
    %c0_4 = arith.constant 0 : index
    %c0_5 = arith.constant 0 : index
    %5 = vector.load %arg3[%c0_4, %c0_5] : memref<32x32xbf16, #tpu.memory_space<vmem>>, vector<32x32xbf16>
    %cst = arith.constant dense<0.000000e+00> : vector<128x32xf32>
    %6 = tpu.matmul %4, %5, %cst {dimension_numbers = #tpu.dot_dimension_numbers<[1], [0], [0], [1], [0, 0, 1, 1], [], []>} : vector<128x32xbf16>, vector<32x32xbf16>, vector<128x32xf32> -> vector<128x32xf32>
    %7 = arith.addf %3, %6 : vector<128x32xf32>
    %c0_6 = arith.constant 0 : index
    %c0_7 = arith.constant 0 : index
    %8 = vector.load %arg5[%c0_6, %c0_7] : memref<128x32xf32, #tpu.memory_space<vmem>>, vector<128x32xf32>
    tpu.vector_store %arg5[%c0_6, %c0_7], %7 {strides = array<i32>} : memref<128x32xf32, #tpu.memory_space<vmem>>, vector<128x32xf32>,
    %c0_i32_8 = arith.constant 0 : i32
    %9 = arith.cmpi eq, %arg1, %c0_i32_8 : i32
    %10 = arith.extui %9 : i1 to i32
    %c0_i32_9 = arith.constant 0 : i32
    %11 = arith.cmpi ne, %10, %c0_i32_9 : i32
    scf.if %11 {
      %c0_10 = arith.constant 0 : index
      %c0_11 = arith.constant 0 : index
      %12 = vector.load %arg5[%c0_10, %c0_11] : memref<128x32xf32, #tpu.memory_space<vmem>>, vector<128x32xf32>
      %13 = arith.truncf %12 : vector<128x32xf32> to vector<128x32xbf16>
      %c0_12 = arith.constant 0 : index
      %c0_13 = arith.constant 0 : index
      %14 = vector.load %arg4[%c0_12, %c0_13] : memref<128x32xbf16, #tpu.memory_space<vmem>>, vector<128x32xbf16>
      tpu.vector_store %arg4[%c0_12, %c0_13], %13 {strides = array<i32>} : memref<128x32xbf16, #tpu.memory_space<vmem>>, vector<128x32xbf16>,
    } else {
    }
    return
  }
  func.func @transform_0(%arg0: i32, %arg1: i32) -> (i32, i32) {
    %c0_i32 = arith.constant 0 : i32
    return %arg0, %arg1 : i32, i32
  }
  func.func @transform_1(%arg0: i32, %arg1: i32) -> (i32, i32) {
    %c0_i32 = arith.constant 0 : i32
    %c0_i32_0 = arith.constant 0 : i32
    return %arg1, %c0_i32 : i32, i32
  }
  func.func @transform_2(%arg0: i32, %arg1: i32) -> (i32, i32) {
    %c0_i32 = arith.constant 0 : i32
    %c0_i32_0 = arith.constant 0 : i32
    return %arg0, %c0_i32 : i32, i32
  }
}

</mosaic_0001>

<bundles_post_ra>
// kernel: tpu_custom_call.1
= control target key start
LH: loop header
LB: loop body
LE: loop exit
PB: predicated region body
PF: predicated region fallthrough
CT: control target
= control target key end

     0   :  { %vm16_vm0 = vcmask 261120   ;;  %v474_v1 = vmov 0.0   ;;  %vm358_vm1 = vcmask 257024   ;;  %s624_s1 = inlined_call_operand.vmem [shape: bf16[32,32], index: 1, kind: input, shape index: {}]   ;;  %s625_s0 = inlined_call_operand.vmem [shape: bf16[128,32], index: 0, kind: input, shape index: {}]   ;;  %s626_s2 = inlined_call_operand.vmem [shape: bf16[128,32], index: 2, kind: output, shape index: {}]  }
   0x1   :  { %v464_v0 = vld [vmem:[%s624_s1] sm:$0xff]   ;;  %19 = vst.msk [vmem:[#allocation2 + $0x10] sm:$0xff] %vm16_vm0, %v474_v1  ;;  %17 = vst.msk [vmem:[#allocation2] sm:$0xff] %vm16_vm0, %v474_v1  ;;  %v465_v2 = vld [vmem:[%s624_s1 + $0x8] sm:$0xff]  }
   0x2   :  { %18 = vst.msk [vmem:[#allocation2 + $0x8] sm:$0xff] %vm16_vm0, %v474_v1  ;;  %20 = vst.msk [vmem:[#allocation2 + $0x18] sm:$0xff] %vm16_vm0, %v474_v1  ;;  %439 = vmatprep.subr.bf16.mxu0 %v464_v0  ;;  %459 = vmatprep.subr.bf16.mxu1 %v464_v0  ;;  %v466_v3 = vld [vmem:[%s625_s0] sm:$0xff]   ;;  %v468_v5 = vld [vmem:[%s625_s0 + $0x8] sm:$0xff]  }
   0x3   :  { %21 = vst.msk [vmem:[#allocation2 + $0x20] sm:$0xff] %vm16_vm0, %v474_v1  ;;  %22 = vst.msk [vmem:[#allocation2 + $0x28] sm:$0xff] %vm16_vm0, %v474_v1  ;;  %440 = vmatpush3.bf16.msra.mxu0 %v464_v0  ;;  %461 = vmatpush3.bf16.msra.mxu1 %v464_v0  ;;  %v467_v4 = vld [vmem:[%s625_s0 + $0x20] sm:$0xff]   ;;  %v469_v6 = vld [vmem:[%s625_s0 + $0x28] sm:$0xff]  }
   0x4   :  { %23 = vst.msk [vmem:[#allocation2 + $0x30] sm:$0xff] %vm16_vm0, %v474_v1  ;;  %24 = vst.msk [vmem:[#allocation2 + $0x38] sm:$0xff] %vm16_vm0, %v474_v1  ;;  %441 = vmatprep.subr.bf16.mxu0 %v465_v2  ;;  %460 = vmatprep.subr.bf16.mxu1 %v465_v2  ;;  %v470_v7 = vld [vmem:[%s625_s0 + $0x10] sm:$0xff]   ;;  %v472_v9 = vld [vmem:[%s625_s0 + $0x18] sm:$0xff]  }
   0x5   :  { %25 = vst.msk [vmem:[#allocation2 + $0x40] sm:$0xff] %vm16_vm0, %v474_v1  ;;  %26 = vst.msk [vmem:[#allocation2 + $0x48] sm:$0xff] %vm16_vm0, %v474_v1  ;;  %443 = vmatprep.mubr.msk.bf16.mxu0 %vm16_vm0, %v466_v3  ;;  %451 = vmatprep.mubr.msk.bf16.mxu1 %vm16_vm0, %v467_v4  ;;  %v471_v8 = vld [vmem:[%s625_s0 + $0x30] sm:$0xff]   ;;  %v473_v10 = vld [vmem:[%s625_s0 + $0x38] sm:$0xff]  }
   0x6   :  { %27 = vst.msk [vmem:[#allocation2 + $0x50] sm:$0xff] %vm16_vm0, %v474_v1  ;;  %28 = vst.msk [vmem:[#allocation2 + $0x58] sm:$0xff] %vm16_vm0, %v474_v1 }
   0x7   :  { %29 = vst.msk [vmem:[#allocation2 + $0x60] sm:$0xff] %vm16_vm0, %v474_v1  ;;  %30 = vst.msk [vmem:[#allocation2 + $0x68] sm:$0xff] %vm16_vm0, %v474_v1  ;;  %442 = vmatpush3.bf16.msra.mxu0 %v465_v2  ;;  %462 = vmatpush3.bf16.msra.mxu1 %v465_v2 }
   0x8   :  { %31 = vst.msk [vmem:[#allocation2 + $0x70] sm:$0xff] %vm16_vm0, %v474_v1  ;;  %32 = vst.msk [vmem:[#allocation2 + $0x78] sm:$0xff] %vm16_vm0, %v474_v1  ;;  %v35_v11 = vld [vmem:[#allocation2 + $0x10] sm:$0xff]  ;;  %v33_v13 = vld [vmem:[#allocation2] sm:$0xff] }
   0x9   :  { %v36_v17 = vld [vmem:[#allocation2 + $0x18] sm:$0xff]  ;;  %v34_v23 = vld [vmem:[#allocation2 + $0x8] sm:$0xff] }
   0xa   :  { %444 = vmatmul.mubr.msk.bf16.vlgmr.msra.gmra.mrb[0].mxu0 %vm16_vm0, %v468_v5  ;;  %452 = vmatmul.mubr.msk.bf16.vlgmr.msra.gmra.mrb[0].mxu1 %vm16_vm0, %v469_v6  ;;  %v37_v37 = vld [vmem:[#allocation2 + $0x20] sm:$0xff]  ;;  %v38_v47 = vld [vmem:[#allocation2 + $0x28] sm:$0xff] }
   0xb   :  { %447 = vmatprep.mubr.msk.bf16.mxu0 %vm16_vm0, %v470_v7  ;;  %455 = vmatprep.mubr.msk.bf16.mxu1 %vm16_vm0, %v471_v8  ;;  %v39_v35 = vld [vmem:[#allocation2 + $0x30] sm:$0xff]  ;;  %v40_v41 = vld [vmem:[#allocation2 + $0x38] sm:$0xff] }
   0xc   :  { %v41_v14 = vld [vmem:[#allocation2 + $0x40] sm:$0xff]  ;;  %v42_v24 = vld [vmem:[#allocation2 + $0x48] sm:$0xff] }
   0xd   :  { %v43_v12 = vld [vmem:[#allocation2 + $0x50] sm:$0xff]  ;;  %v44_v18 = vld [vmem:[#allocation2 + $0x58] sm:$0xff] }
   0xe   :  { %v45_v38 = vld [vmem:[#allocation2 + $0x60] sm:$0xff]  ;;  %v46_v48 = vld [vmem:[#allocation2 + $0x68] sm:$0xff] }
   0xf   :  { %v47_v36 = vld [vmem:[#allocation2 + $0x70] sm:$0xff]  ;;  %v48_v42 = vld [vmem:[#allocation2 + $0x78] sm:$0xff] }
  0x12   :  { %448 = vmatmul.mubr.msk.bf16.gmra.mrb[4].mxu0 %vm16_vm0, %v472_v9  ;;  %456 = vmatmul.mubr.msk.bf16.gmra.mrb[4].mxu1 %vm16_vm0, %v473_v10 }
  0xdd   :  { %v445_v15 = vpop.f32.mrb[0].mxu0  ;;  %v453_v16 = vpop.f32.mrb[0].mxu1 }
  0xde   :  { %v245_v19 = vadd.f32 %v445_v15, %v35_v11  ;;  %v253_v20 = vadd.f32 %v453_v16, %v43_v12  ;;  %v180_v21 = vpop.f32.mrb[1].mxu0  ;;  %v212_v22 = vpop.f32.mrb[1].mxu1 }
  0xdf   :  { %v243_v25 = vadd.f32 %v180_v21, %v33_v13  ;;  %v251_v26 = vadd.f32 %v212_v22, %v41_v14  ;;  %v446_v27 = vpop.f32.mrb[2].mxu0  ;;  %v454_v28 = vpop.f32.mrb[2].mxu1 }
  0xe0   :  { %261 = vst.msk [vmem:[#allocation2 + $0x10] sm:$0xff] %vm16_vm0, %v245_v19  ;;  %269 = vst.msk [vmem:[#allocation2 + $0x50] sm:$0xff] %vm16_vm0, %v253_v20  ;;  %v246_v29 = vadd.f32 %v446_v27, %v36_v17  ;;  %v254_v30 = vadd.f32 %v454_v28, %v44_v18  ;;  %v183_v31 = vpop.f32.mrb[3].mxu0  ;;  %v215_v32 = vpop.f32.mrb[3].mxu1 }
  0xe1   :  { %259 = vst.msk [vmem:[#allocation2] sm:$0xff] %vm16_vm0, %v243_v25  ;;  %267 = vst.msk [vmem:[#allocation2 + $0x40] sm:$0xff] %vm16_vm0, %v251_v26  ;;  %v244_v33 = vadd.f32 %v183_v31, %v34_v23  ;;  %v252_v34 = vadd.f32 %v215_v32, %v42_v24 }
  0xe2   :  { %262 = vst.msk [vmem:[#allocation2 + $0x18] sm:$0xff] %vm16_vm0, %v246_v29  ;;  %270 = vst.msk [vmem:[#allocation2 + $0x58] sm:$0xff] %vm16_vm0, %v254_v30 }
  0xe3   :  { %260 = vst.msk [vmem:[#allocation2 + $0x8] sm:$0xff] %vm16_vm0, %v244_v33  ;;  %268 = vst.msk [vmem:[#allocation2 + $0x48] sm:$0xff] %vm16_vm0, %v252_v34 }
  0xe5   :  { %v449_v39 = vpop.f32.mrb[4].mxu0  ;;  %v457_v40 = vpop.f32.mrb[4].mxu1 }
  0xe6   :  { %v249_v43 = vadd.f32 %v449_v39, %v39_v35  ;;  %v257_v44 = vadd.f32 %v457_v40, %v47_v36  ;;  %v196_v45 = vpop.f32.mrb[5].mxu0  ;;  %v228_v46 = vpop.f32.mrb[5].mxu1 }
  0xe7   :  { %v280_v49 = vld [vmem:[#allocation2 + $0x10] sm:$0xff]  ;;  %v247_v51 = vadd.f32 %v196_v45, %v37_v37  ;;  %v255_v52 = vadd.f32 %v228_v46, %v45_v38  ;;  %v450_v53 = vpop.f32.mrb[6].mxu0  ;;  %v458_v54 = vpop.f32.mrb[6].mxu1 }
  0xe8   :  { %v288_v50 = vld [vmem:[#allocation2 + $0x50] sm:$0xff]  ;;  %v415_v55 = vpack.c.bf16 %v280_v49, %v280_v49  ;;  %v278_v57 = vld [vmem:[#allocation2] sm:$0xff]  ;;  %265 = vst.msk [vmem:[#allocation2 + $0x30] sm:$0xff] %vm16_vm0, %v249_v43  ;;  %273 = vst.msk [vmem:[#allocation2 + $0x70] sm:$0xff] %vm16_vm0, %v257_v44  ;;  %v250_v59 = vadd.f32 %v450_v53, %v40_v41  ;;  %v258_v60 = vadd.f32 %v458_v54, %v48_v42  ;;  %v199_v61 = vpop.f32.mrb[7].mxu0  ;;  %v231_v62 = vpop.f32.mrb[7].mxu1 }
  0xe9   :  { %v423_v56 = vpack.c.bf16 %v288_v50, %v288_v50  ;;  %v286_v58 = vld [vmem:[#allocation2 + $0x40] sm:$0xff]  ;;  %v413_v63 = vpack.c.bf16 %v278_v57, %v278_v57  ;;  %v281_v1 = vld [vmem:[#allocation2 + $0x18] sm:$0xff]  ;;  %263 = vst.msk [vmem:[#allocation2 + $0x20] sm:$0xff] %vm16_vm0, %v247_v51  ;;  %271 = vst.msk [vmem:[#allocation2 + $0x60] sm:$0xff] %vm16_vm0, %v255_v52  ;;  %v248_v3 = vadd.f32 %v199_v61, %v38_v47 }
  0xea   :  { %v421_v0 = vpack.c.bf16 %v286_v58, %v286_v58  ;;  %v289_v2 = vld [vmem:[#allocation2 + $0x58] sm:$0xff]  ;;  %v256_v4 = vadd.f32 %v231_v62, %v46_v48  ;;  %361 = vst.msk [vmem:[%s626_s2 + $0x8] sm:$0xf] %vm358_vm1, %v415_v55  ;;  %v416_v5 = vpack.c.bf16 %v281_v1, %v281_v1  ;;  %v279_v7 = vld [vmem:[#allocation2 + $0x8] sm:$0xff] }
  0xeb   :  { %369 = vst.msk [vmem:[%s626_s2 + $0x28] sm:$0xf] %vm358_vm1, %v423_v56  ;;  %v424_v6 = vpack.c.bf16 %v289_v2, %v289_v2  ;;  %v287_v8 = vld [vmem:[#allocation2 + $0x48] sm:$0xff]  ;;  %359 = vst.msk [vmem:[%s626_s2] sm:$0xf] %vm358_vm1, %v413_v63  ;;  %v414_v9 = vpack.c.bf16 %v279_v7, %v279_v7 }
  0xec   :  { %266 = vst.msk [vmem:[#allocation2 + $0x38] sm:$0xff] %vm16_vm0, %v250_v59  ;;  %274 = vst.msk [vmem:[#allocation2 + $0x78] sm:$0xff] %vm16_vm0, %v258_v60  ;;  %v422_v10 = vpack.c.bf16 %v287_v8, %v287_v8 }
  0xed   :  { %367 = vst.msk [vmem:[%s626_s2 + $0x20] sm:$0xf] %vm358_vm1, %v421_v0  ;;  %362 = vst.msk [vmem:[%s626_s2 + $0xc] sm:$0xf] %vm358_vm1, %v416_v5 }
  0xee   :  { %264 = vst.msk [vmem:[#allocation2 + $0x28] sm:$0xff] %vm16_vm0, %v248_v3  ;;  %272 = vst.msk [vmem:[#allocation2 + $0x68] sm:$0xff] %vm16_vm0, %v256_v4 }
  0xef   :  { %370 = vst.msk [vmem:[%s626_s2 + $0x2c] sm:$0xf] %vm358_vm1, %v424_v6  ;;  %360 = vst.msk [vmem:[%s626_s2 + $0x4] sm:$0xf] %vm358_vm1, %v414_v9  ;;  %v284_v11 = vld [vmem:[#allocation2 + $0x30] sm:$0xff] }
  0xf0   :  { %368 = vst.msk [vmem:[%s626_s2 + $0x24] sm:$0xf] %vm358_vm1, %v422_v10  ;;  %v292_v12 = vld [vmem:[#allocation2 + $0x70] sm:$0xff]  ;;  %v419_v13 = vpack.c.bf16 %v284_v11, %v284_v11  ;;  %v282_v15 = vld [vmem:[#allocation2 + $0x20] sm:$0xff] }
  0xf1   :  { %v427_v14 = vpack.c.bf16 %v292_v12, %v292_v12  ;;  %v290_v16 = vld [vmem:[#allocation2 + $0x60] sm:$0xff]  ;;  %v417_v17 = vpack.c.bf16 %v282_v15, %v282_v15 }
  0xf2   :  { %v425_v18 = vpack.c.bf16 %v290_v16, %v290_v16  ;;  %365 = vst.msk [vmem:[%s626_s2 + $0x18] sm:$0xf] %vm358_vm1, %v419_v13 }
  0xf3   :  { %v285_v19 = vld [vmem:[#allocation2 + $0x38] sm:$0xff]  ;;  %373 = vst.msk [vmem:[%s626_s2 + $0x38] sm:$0xf] %vm358_vm1, %v427_v14  ;;  %363 = vst.msk [vmem:[%s626_s2 + $0x10] sm:$0xf] %vm358_vm1, %v417_v17 }
  0xf4   :  { %v293_v20 = vld [vmem:[#allocation2 + $0x78] sm:$0xff]  ;;  %v420_v21 = vpack.c.bf16 %v285_v19, %v285_v19  ;;  %371 = vst.msk [vmem:[%s626_s2 + $0x30] sm:$0xf] %vm358_vm1, %v425_v18 }
  0xf5   :  { %v428_v22 = vpack.c.bf16 %v293_v20, %v293_v20  ;;  %v283_v23 = vld [vmem:[#allocation2 + $0x28] sm:$0xff] }
  0xf6   :  { %v291_v24 = vld [vmem:[#allocation2 + $0x68] sm:$0xff]  ;;  %v418_v25 = vpack.c.bf16 %v283_v23, %v283_v23  ;;  %366 = vst.msk [vmem:[%s626_s2 + $0x1c] sm:$0xf] %vm358_vm1, %v420_v21 }
  0xf7   :  { %v426_v26 = vpack.c.bf16 %v291_v24, %v291_v24  ;;  %374 = vst.msk [vmem:[%s626_s2 + $0x3c] sm:$0xf] %vm358_vm1, %v428_v22 }
  0xf8   :  { %364 = vst.msk [vmem:[%s626_s2 + $0x14] sm:$0xf] %vm358_vm1, %v418_v25 }
  0xf9   :  { %372 = vst.msk [vmem:[%s626_s2 + $0x34] sm:$0xf] %vm358_vm1, %v426_v26 }

</bundles_post_ra>
